<compile_context>
chip_gen: v6e
topology: v6e:2x2x1
jax: 0.10.0
libtpu: 0.0.40
codegen_flags: <defaults>
</compile_context>

<pallas_src>
import functools

import jax
import jax.numpy as jnp
from jax import lax
from jax.experimental import pallas as pl
from jax.experimental.pallas import tpu as pltpu

APPERTURE = 20          # SelfAttention(apperture=20, ignore_itself=False)
LN_EPS = 1e-6           # VASNet LayerNorm eps (added to the *unbiased* std)
MASK_NEG = -1.0e30      # finite "-inf"; exp() underflows to exactly 0 in f32
VMEM_LIMIT = 48 << 20   # safe on v7x (64 MiB physical); conservative on v5e/v6e
# TODO(synk): on v5e/v6e (128 MiB VMEM) keep wkqv fully resident in Kernel A and
#             raise vmem_limit_bytes (needs chip dispatch via pltpu.get_tpu_info).


def _vasnet_layer_norm(v, gamma, beta):
    """a_2 * (x - mean) / (std_unbiased + eps) + b_2 (eps on std, n-1 variance)."""
    mu = jnp.mean(v, axis=-1, keepdims=True)
    d = v - mu
    var = jnp.sum(d * d, axis=-1, keepdims=True) * (1.0 / (v.shape[-1] - 1))
    return gamma * d / (jnp.sqrt(var) + LN_EPS) + beta


# ---------------------------------------------------------------------------
# Kernel A: fused K/Q/V projection.
# grid = (N//bn [parallel], 3M//tn [parallel], M//bk [arbitrary, accumulated])
# ---------------------------------------------------------------------------
def qkv_proj_kernel(x_ref, w_ref, kqv_ref, acc_ref):
    @pl.when(pl.program_id(2) == 0)
    def _():
        acc_ref[...] = jnp.zeros_like(acc_ref)

    acc_ref[...] += jnp.dot(x_ref[...], w_ref[...],
                            preferred_element_type=jnp.float32)

    @pl.when(pl.program_id(2) == pl.num_programs(2) - 1)
    def _():
        kqv_ref[...] = acc_ref[...].astype(kqv_ref.dtype)


# ---------------------------------------------------------------------------
# Kernel B1: band-limited attention, row-tiled over query blocks.
# ---------------------------------------------------------------------------
def band_attn_kernel(k_ref, q_ref, attw_ref, *, tq, win, n_total):
    qi = pl.program_id(0)
    pad = (win - tq) // 2
    s = jnp.clip(qi * tq - pad, 0, n_total - win)          # window start (mult of 8)
    k_win = k_ref[pl.ds(pl.multiple_of(s, 8), win), :]      # (win, m) bf16
    q = q_ref[...]                                          # (tq, m) bf16, 0.06 folded

    # logits = Q @ K_win^T — contract feature dims, no materialized transpose.
    logits = lax.dot_general(q, k_win, (((1,), (1,)), ((), ())),
                             preferred_element_type=jnp.float32)     # (tq, win)

    rows = qi * tq + lax.broadcasted_iota(jnp.int32, (tq, win), 0)
    cols = s + lax.broadcasted_iota(jnp.int32, (tq, win), 1)
    logits = jnp.where(jnp.abs(rows - cols) >= APPERTURE, MASK_NEG, logits)

    row_max = jnp.max(logits, axis=-1, keepdims=True)
    e = jnp.exp(logits - row_max)
    # approx reciprocal (~2^-12 rel err) is fine for inference softmax.
    attw_ref[...] = e * pl.reciprocal(jnp.sum(e, axis=-1, keepdims=True), approx=True)


# ---------------------------------------------------------------------------
# Kernel B2: y = att^T @ V  + output proj + residual + LN + ka/ReLU/LN + kd.
# Row-tiled over output blocks; att/V come from the three clamped row blocks
# that can contribute (|i-j| < 20 < tq).  Clamped duplicates are gated to 0.
# ---------------------------------------------------------------------------
def head_kernel(ap_ref, ac_ref, an_ref, vp_ref, vc_ref, vn_ref, x_ref,
                wo_ref, gy_ref, by_ref, wa_ref, ba_ref, gka_ref, bka_ref,
                wd_ref, bd_ref, score_ref):
    qi = pl.program_id(0)
    nb = pl.num_programs(0)
    gate_p = jnp.where(qi > 0, 1.0, 0.0).astype(jnp.float32)
    gate_n = jnp.where(qi < nb - 1, 1.0, 0.0).astype(jnp.float32)

    def contrib(a, v_ref):
        # y += a^T @ v  (contract dim 0 of both) == VASNet's (V^T @ att)^T slice.
        # TODO(synk): verify via pl.lower_as_mlir that no XLU transpose of the
        #             (tq,tq) tile is inserted; if so, transpose the V tile instead.
        return lax.dot_general(a.astype(v_ref.dtype), v_ref[...],
                               (((0,), (0,)), ((), ())),
                               preferred_element_type=jnp.float32)

    y = (contrib(ap_ref[...] * gate_p, vp_ref)
         + contrib(ac_ref[...], vc_ref)
         + contrib(an_ref[...] * gate_n, vn_ref))                        # (tq, m)

    y = jnp.dot(y.astype(jnp.bfloat16), wo_ref[...],                     # output_linear
                preferred_element_type=jnp.float32)
    y = y + x_ref[...]                                                   # residual (f32)
    y = _vasnet_layer_norm(y, gy_ref[...], by_ref[...])                  # layer_norm_y

    h = jnp.dot(y.astype(jnp.bfloat16), wa_ref[...],                     # ka
                preferred_element_type=jnp.float32) + ba_ref[...]
    h = jnp.maximum(h, 0.0)                                              # relu
    h = _vasnet_layer_norm(h, gka_ref[...], bka_ref[...])                # layer_norm_ka

    # kd (hidden -> 1) as a VPU reduction; write a lane-dense (tq,128) slab.
    sc = jnp.sum(h * wd_ref[...], axis=-1, keepdims=True) + bd_ref[...]
    score_ref[...] = jnp.broadcast_to(jax.nn.sigmoid(sc), score_ref.shape)


# ---------------------------------------------------------------------------
# Weight prep + wrapper
# ---------------------------------------------------------------------------
def prepare_params(params):
    """Fuse + pre-transpose + bf16-cast once, outside the kernels."""
    wkqv = jnp.concatenate(
        [params["wk"].T, 0.06 * params["wq"].T, params["wv"].T], axis=1)   # (m, 3m)
    return {
        "wkqv": wkqv.astype(jnp.bfloat16),
        "wo_t": params["wo"].T.astype(jnp.bfloat16),
        "wa_t": params["wa"].T.astype(jnp.bfloat16),
        "g_y": params["g_y"], "b_y": params["b_y"],
        "ba": params["ba"],
        "g_ka": params["g_ka"], "b_ka": params["b_ka"],
        "wd": params["wd"],                               # (1, hidden) f32 (VPU reduce)
        "bd": params["bd"],                               # (1, 1)
    }


def vasnet_resnet_forward(x_bnm, prepped):
    """x_bnm: (1, N, M) f32.  Returns (scores (1, N), att_weights (N, N))."""
    b, n_seq, m = x_bnm.shape
    x = x_bnm.reshape(b * n_seq, m)
    N = b * n_seq
    hidden = prepped["wa_t"].shape[1]
    assert N % 8 == 0 and m % 128 == 0, "pad N to a multiple of 8, m to 128"

    x_bf16 = x.astype(jnp.bfloat16)       # f32 x is kept only for the residual path

    # ---- tile choices -------------------------------------------------------
    if N % 256 == 0:
        tq = 256
    elif N % 128 == 0:
        tq = 128
    else:
        tq = N
    nb = N // tq
    win = N if N <= tq + 128 else tq + 128     # aperture-20 band always inside window

    bn = 256 if N % 256 == 0 else (128 if N % 128 == 0 else N)
    three_m = 3 * m
    tn = 512 if (three_m % 512 == 0 and three_m > 512) else three_m
    if m % 512 == 0 and m > 512:
        bk = 512
    elif m % 256 == 0:
        bk = 256
    elif m % 128 == 0:
        bk = 128
    else:
        bk = m

    # ---- Kernel A: fused K/Q/V projection -----------------------------------
    kqv = pl.pallas_call(
        qkv_proj_kernel,
        out_shape=jax.ShapeDtypeStruct((N, three_m), jnp.bfloat16),
        grid=(N // bn, three_m // tn, m // bk),
        in_specs=[
            pl.BlockSpec((bn, bk), lambda i, j, k: (i, k)),
            pl.BlockSpec((bk, tn), lambda i, j, k: (k, j)),
        ],
        out_specs=pl.BlockSpec((bn, tn), lambda i, j, k: (i, j)),
        scratch_shapes=[pltpu.VMEM((bn, tn), jnp.float32)],
        compiler_params=pltpu.CompilerParams(
            dimension_semantics=("parallel", "parallel", "arbitrary"),
            vmem_limit_bytes=VMEM_LIMIT),
    )(x_bf16, prepped["wkqv"])

    # ---- Kernel B1: band-limited attention ----------------------------------
    att_win = pl.pallas_call(
        functools.partial(band_attn_kernel, tq=tq, win=win, n_total=N),
        out_shape=jax.ShapeDtypeStruct((N, win), jnp.float32),
        grid=(nb,),
        in_specs=[
            pl.BlockSpec((N, m), lambda i: (0, 0)),      # K columns of kqv, resident
            pl.BlockSpec((tq, m), lambda i: (i, 1)),     # Q row block (scale folded)
        ],
        out_specs=pl.BlockSpec((tq, win), lambda i: (i, 0)),
        compiler_params=pltpu.CompilerParams(
            dimension_semantics=("parallel",), vmem_limit_bytes=VMEM_LIMIT),
    )(kqv, kqv)
    # TODO(synk): for very long sequences stream K via a key-window grid axis
    #             instead of keeping the (N, m) K slab VMEM-resident.

    # Scatter windowed rows into the full (N, N) attention (static slices);
    # everything outside the window is exactly 0 (== softmax of -inf).
    if win == N:
        att = att_win
    else:
        pad = (win - tq) // 2
        att = jnp.zeros((N, N), jnp.float32)
        for r in range(nb):
            s = min(max(r * tq - pad, 0), N - win)
            att = att.at[r * tq:(r + 1) * tq, s:s + win].set(
                att_win[r * tq:(r + 1) * tq])

    # ---- Kernel B2: att^T @ V + output proj + residual + LN + head ----------
    last = nb - 1
    args = (att, att, att, kqv, kqv, kqv, x,
            prepped["wo_t"], prepped["g_y"], prepped["b_y"],
            prepped["wa_t"], prepped["ba"], prepped["g_ka"], prepped["b_ka"],
            prepped["wd"], prepped["bd"])
    in_specs = [
        pl.BlockSpec((tq, tq), lambda i: (jnp.maximum(i - 1, 0), i)),     # att prev rows
        pl.BlockSpec((tq, tq), lambda i: (i, i)),                         # att cur rows
        pl.BlockSpec((tq, tq), lambda i: (jnp.minimum(i + 1, last), i)),  # att next rows
        pl.BlockSpec((tq, m), lambda i: (jnp.maximum(i - 1, 0), 2)),      # V prev rows
        pl.BlockSpec((tq, m), lambda i: (i, 2)),                          # V cur rows
        pl.BlockSpec((tq, m), lambda i: (jnp.minimum(i + 1, last), 2)),   # V next rows
        pl.BlockSpec((tq, m), lambda i: (i, 0)),                          # residual x f32
        pl.BlockSpec((m, m), lambda i: (0, 0)),                           # wo_t resident
        pl.BlockSpec((1, m), lambda i: (0, 0)),                           # g_y
        pl.BlockSpec((1, m), lambda i: (0, 0)),                           # b_y
        pl.BlockSpec((m, hidden), lambda i: (0, 0)),                      # wa_t resident
        pl.BlockSpec((1, hidden), lambda i: (0, 0)),                      # ba
        pl.BlockSpec((1, hidden), lambda i: (0, 0)),                      # g_ka
        pl.BlockSpec((1, hidden), lambda i: (0, 0)),                      # b_ka
        pl.BlockSpec((1, hidden), lambda i: (0, 0)),                      # wd
        pl.BlockSpec((1, 1), lambda i: (0, 0)),                           # bd
    ]
    score_slab = pl.pallas_call(
        head_kernel,
        out_shape=jax.ShapeDtypeStruct((N, 128), jnp.float32),   # lane-dense score slab
        grid=(nb,),
        in_specs=in_specs,
        out_specs=pl.BlockSpec((tq, 128), lambda i: (i, 0)),
        compiler_params=pltpu.CompilerParams(
            dimension_semantics=("parallel",), vmem_limit_bytes=VMEM_LIMIT),
    )(*args)
    # TODO(synk): at production shapes on v7x, column-tile wo_t/wa_t (or Buffered(1))
    #             so the resident head weights are not double-buffered.

    scores = score_slab[:, 0].reshape(1, N)
    return scores, att


# ---------------------------------------------------------------------------
# Synthetic parameters + pure-JAX reference (built from the same bf16 weights)
# ---------------------------------------------------------------------------
def init_params(key, m, hidden):
    ks = jax.random.split(key, 8)
    scale = 0.02
    return {
        "wk": scale * jax.random.normal(ks[0], (m, m), jnp.float32),
        "wq": scale * jax.random.normal(ks[1], (m, m), jnp.float32),
        "wv": scale * jax.random.normal(ks[2], (m, m), jnp.float32),
        "wo": scale * jax.random.normal(ks[3], (m, m), jnp.float32),
        "g_y": jnp.ones((1, m), jnp.float32),
        "b_y": jnp.zeros((1, m), jnp.float32),
        "wa": scale * jax.random.normal(ks[4], (hidden, m), jnp.float32),
        "ba": scale * jax.random.normal(ks[5], (1, hidden), jnp.float32),
        "g_ka": jnp.ones((1, hidden), jnp.float32),
        "b_ka": jnp.zeros((1, hidden), jnp.float32),
        "wd": scale * jax.random.normal(ks[6], (1, hidden), jnp.float32),
        "bd": scale * jax.random.normal(ks[7], (1, 1), jnp.float32),
        # NOTE: kb / kc exist in __init__ but are unused in forward -> omitted.
    }


def _ref_layer_norm(v, gamma, beta):
    mu = jnp.mean(v, axis=-1, keepdims=True)
    std = jnp.std(v, axis=-1, keepdims=True, ddof=1)
    return gamma * (v - mu) / (std + LN_EPS) + beta


def reference_forward(x_bnm, prepped):
    b, n_seq, m = x_bnm.shape
    x = x_bnm.reshape(b * n_seq, m)
    n = x.shape[0]
    kqv = x @ prepped["wkqv"].astype(jnp.float32)
    k, q, v = kqv[:, :m], kqv[:, m:2 * m], kqv[:, 2 * m:]
    logits = q @ k.T
    idx = jnp.arange(n)
    mask = jnp.abs(idx[:, None] - idx[None, :]) >= APPERTURE
    logits = jnp.where(mask, -jnp.inf, logits)
    att = jax.nn.softmax(logits, axis=-1)
    y = att.T @ v                                   # VASNet: (V^T @ att)^T
    y = y @ prepped["wo_t"].astype(jnp.float32)
    y = y + x
    y = _ref_layer_norm(y, prepped["g_y"], prepped["b_y"])
    h = jnp.maximum(y @ prepped["wa_t"].astype(jnp.float32) + prepped["ba"], 0.0)
    h = _ref_layer_norm(h, prepped["g_ka"], prepped["b_ka"])
    s = jnp.sum(h * prepped["wd"], axis=-1, keepdims=True) + prepped["bd"]
    return jax.nn.sigmoid(s)[:, 0].reshape(1, n), att


if __name__ == "__main__":
    # Scaled-down shapes consistent with the module (module: m=2048, hidden=1024).
    SEQ, M, HIDDEN = 384, 256, 128     # exercises row tiling (3 blocks) + band window

    key = jax.random.PRNGKey(0)
    k_x, k_p = jax.random.split(key)
    x = jax.random.normal(k_x, (1, SEQ, M), jnp.float32)   # (batch=1, seq, feat)
    params = init_params(k_p, M, HIDDEN)
    prepped = prepare_params(params)

    scores, att_weights = jax.block_until_ready(vasnet_resnet_forward(x, prepped))

    assert scores.shape == (1, SEQ)
    assert att_weights.shape == (SEQ, SEQ)
    assert bool(jnp.all(jnp.isfinite(scores)))
    assert bool(jnp.all(jnp.isfinite(att_weights)))

    # Numerical sanity vs pure-JAX reference using the same bf16 weights.
    ref_scores, ref_att = reference_forward(x, prepped)
    assert float(jnp.max(jnp.abs(att_weights - ref_att))) < 5e-3
    assert float(jnp.max(jnp.abs(scores - ref_scores))) < 2e-2

    print("KERNEL_OK")
</pallas_src>

<mosaic_0001>
module attributes {stable_mosaic.version = 11 : i64} {
  func.func @qkv_proj_kernel(%arg0: i32, %arg1: i32, %arg2: i32, %arg3: memref<128x256xbf16, #tpu.memory_space<vmem>>, %arg4: memref<256x768xbf16, #tpu.memory_space<vmem>>, %arg5: memref<128x768xbf16, #tpu.memory_space<vmem>>, %arg6: memref<128x768xf32, #tpu.memory_space<vmem>>) attributes {dimension_semantics = [#tpu.dimension_semantics<parallel>, #tpu.dimension_semantics<parallel>, #tpu.dimension_semantics<arbitrary>], iteration_bounds = array<i64: 3, 1, 1>, scalar_prefetch = 0 : i64, scratch_operands = 1 : i64, tpu.core_type = #tpu.core_type<tc>, window_params = [{transform_indices = @transform_0, window_bounds = array<i64: 128, 256>}, {transform_indices = @transform_1, window_bounds = array<i64: 256, 768>}, {transform_indices = @transform_2, window_bounds = array<i64: 128, 768>}]} {
    %c0_i32 = arith.constant 0 : i32
    %0 = arith.cmpi eq, %arg2, %c0_i32 : i32
    %1 = arith.extui %0 : i1 to i32
    %c0_i32_0 = arith.constant 0 : i32
    %2 = arith.cmpi ne, %1, %c0_i32_0 : i32
    scf.if %2 {
      %cst_10 = arith.constant 0.000000e+00 : f32
      %12 = vector.broadcast %cst_10 : f32 to vector<128x768xf32>
      %c0_11 = arith.constant 0 : index
      %c0_12 = arith.constant 0 : index
      %13 = vector.load %arg6[%c0_11, %c0_12] : memref<128x768xf32, #tpu.memory_space<vmem>>, vector<128x768xf32>
      tpu.vector_store %arg6[%c0_11, %c0_12], %12 {strides = array<i32>} : memref<128x768xf32, #tpu.memory_space<vmem>>, vector<128x768xf32>,
    } else {
    }
    %c0 = arith.constant 0 : index
    %c0_1 = arith.constant 0 : index
    %3 = vector.load %arg6[%c0, %c0_1] : memref<128x768xf32, #tpu.memory_space<vmem>>, vector<128x768xf32>
    %c0_2 = arith.constant 0 : index
    %c0_3 = arith.constant 0 : index
    %4 = vector.load %arg3[%c0_2, %c0_3] : memref<128x256xbf16, #tpu.memory_space<vmem>>, vector<128x256xbf16>
    %c0_4 = arith.constant 0 : index
    %c0_5 = arith.constant 0 : index
    %5 = vector.load %arg4[%c0_4, %c0_5] : memref<256x768xbf16, #tpu.memory_space<vmem>>, vector<256x768xbf16>
    %cst = arith.constant dense<0.000000e+00> : vector<128x768xf32>
    %6 = tpu.matmul %4, %5, %cst {dimension_numbers = #tpu.dot_dimension_numbers<[1], [0], [0], [1], [0, 0, 1, 1], [], []>} : vector<128x256xbf16>, vector<256x768xbf16>, vector<128x768xf32> -> vector<128x768xf32>
    %7 = arith.addf %3, %6 : vector<128x768xf32>
    %c0_6 = arith.constant 0 : index
    %c0_7 = arith.constant 0 : index
    %8 = vector.load %arg6[%c0_6, %c0_7] : memref<128x768xf32, #tpu.memory_space<vmem>>, vector<128x768xf32>
    tpu.vector_store %arg6[%c0_6, %c0_7], %7 {strides = array<i32>} : memref<128x768xf32, #tpu.memory_space<vmem>>, vector<128x768xf32>,
    %c0_i32_8 = arith.constant 0 : i32
    %9 = arith.cmpi eq, %arg2, %c0_i32_8 : i32
    %10 = arith.extui %9 : i1 to i32
    %c0_i32_9 = arith.constant 0 : i32
    %11 = arith.cmpi ne, %10, %c0_i32_9 : i32
    scf.if %11 {
      %c0_10 = arith.constant 0 : index
      %c0_11 = arith.constant 0 : index
      %12 = vector.load %arg6[%c0_10, %c0_11] : memref<128x768xf32, #tpu.memory_space<vmem>>, vector<128x768xf32>
      %13 = arith.truncf %12 : vector<128x768xf32> to vector<128x768xbf16>
      %c0_12 = arith.constant 0 : index
      %c0_13 = arith.constant 0 : index
      %14 = vector.load %arg5[%c0_12, %c0_13] : memref<128x768xbf16, #tpu.memory_space<vmem>>, vector<128x768xbf16>
      tpu.vector_store %arg5[%c0_12, %c0_13], %13 {strides = array<i32>} : memref<128x768xbf16, #tpu.memory_space<vmem>>, vector<128x768xbf16>,
    } else {
    }
    return
  }
  func.func @transform_0(%arg0: i32, %arg1: i32, %arg2: i32) -> (i32, i32) {
    %c0_i32 = arith.constant 0 : i32
    return %arg0, %arg2 : i32, i32
  }
  func.func @transform_1(%arg0: i32, %arg1: i32, %arg2: i32) -> (i32, i32) {
    %c0_i32 = arith.constant 0 : i32
    return %arg2, %arg1 : i32, i32
  }
  func.func @transform_2(%arg0: i32, %arg1: i32, %arg2: i32) -> (i32, i32) {
    %c0_i32 = arith.constant 0 : i32
    return %arg0, %arg1 : i32, i32
  }
}

</mosaic_0001>

<bundles_post_ra>
// kernel: tpu_custom_call.1
= control target key start
LH: loop header
LB: loop body
LE: loop exit
PB: predicated region body
PF: predicated region fallthrough
CT: control target
= control target key end

     0   :  { %7 = vsyncpa [#allocation4], 0  ;;  %s3154_s0 = inlined_call_operand.hbm [shape: bf16[384,256], index: 0, kind: input, shape index: {}]   ;;  %s3155_s1 = inlined_call_operand.hbm [shape: bf16[256,768], index: 1, kind: input, shape index: {}]   ;;  %s3156_s2 = inlined_call_operand.hbm [shape: bf16[384,768], index: 2, kind: output, shape index: {}]  }
   0x1   :  { %9 = vsyncpa [#allocation4 + $0x1], 0 }
   0x2   :  { %10 = vsyncpa [#allocation7], 0 }
   0x3   :  { %11 = vsyncpa [#allocation5], 0 }
   0x4   :  { %13 = vsyncpa [#allocation5 + $0x1], 0  ;;  %s2850_s9 = smov 0   ;;  %s2852_s10 = smov 0  }
   0x5   :  { %s2854_s11 = smov 0   ;;  %s2856_s12 = smov 0  }
   0x6   :  { %s2858_s13 = smov 0   ;;  %s2860_s14 = smov 0  }
   0x7 LB: > { %s2178_s15 = sadd.s32 4294967295, %s2824_s14   ;;  %s2179_s16 = sadd.s32 4294967294, %s2824_s14   ;;  %s2824_s14 = sphi %s2860_s14, %s19_s14   ;;  %s2820_s13 = sphi %s2858_s13, %s3173_s13   ;;  %s2816_s12 = sphi %s2856_s12, %s3172_s12   ;;  %s2812_s11 = sphi %s2854_s11, %s3171_s11   ;;  %s2808_s10 = sphi %s2852_s10, %s3170_s10   ;;  %s2804_s9 = sphi %s2850_s9, %s3169_s9  }
   0x8   : > { %p60_p0 = scmp.ne.s32.totalorder %s2808_s10, %s2804_s9  ;;  %p2884_p1 = scmp.eq.s32.totalorder %s2178_s15, 0 }
   0x9   : > { %p2888_p2 = scmp.eq.s32.totalorder %s2178_s15, 2  ;;  %p120_p3 = scmp.eq.s32.totalorder %s2179_s16, 2 }
   0xa   : > { %p2894_p4 = por %p2884_p1, %p60_p0  ;;  %p2180_p5 = scmp.ge.s32.totalorder %s2824_s14, 1 }
   0xb   : > { %p2899_p6 = por %p120_p3, %p60_p0  ;;  %p127_p7 = scmp.lt.s32.totalorder %s2824_s14, 4 }
   0xc   : > { %s2826_s22 = smov [#allocation6]   ;;  %s38_s25 = sadd.s32 1, %s2820_s13 }
   0xd   : > { %s3161_s20 = scalar_select %p2899_p6, 1, 0 }
   0xe   : > { %p2904_p8 = pnand %p2180_p5, %p127_p7  ;;  %s145_s23 = sshll.u32 %s2826_s22, 4  ;;  %s146_s23 = int_to_ptr.vmem [resolvable:$true] %s145_s23 }
   0xf   : > { %s2697_s26 = scalar_lea.vmem %s146_s23, 12288  ;;  %p2705_p3 = scmp.lt.s32.totalorder %s146_s23, %s146_s23 }
  0x10   : > { %p2447_p9 = pneg %p2904_p8  ;;  %p2698_p12 = scmp.ne.s32.totalorder %s146_s23, %s2697_s26 }
  0x11   : > { %p2706_p5 = scmp.lt.s32.totalorder %s2697_s26, %s2697_s26 }
  0x12   : > { %p2912_p10 = pnand %p2447_p9, %p2884_p1 }
  0x13   : > { %p2707_p7 = por %p2706_p5, %p2705_p3 }
  0x14   : > { %p2688_p11 = pneg %p2912_p10 }
  0x16   : > { %p2700_p13 = pnand %p2698_p12, %p2688_p11 }
  0x18   : > { %p2701_p0 = pneg %p2700_p13 }
  0x1a   : > { %p2708_p6 = pnand %p2707_p7, %p2701_p0 }
  0x1c   : > { %2711 = shalt.err (!%p2708_p6)
}
  0x1d   : > { %s2827_s27 = smov 384   ;;  %s2828_s28 = smov 24  }
  0x1e   : > { %2450 = dma.hbm_to_vmem [thread:$0]  (!%p2912_p10), %s3155_s1, 12288, %s146_s23, [#allocation7], %s2827_s27, %s2827_s27, %s2828_s28  }
  0x1f   : > { %p40_p9 = scmp.ge.s32.totalorder %s38_s25, 3  ;;  %s47_s3 = sadd.s32 1, %s2812_s11 }
  0x20   : > { %p54_p6 = scmp.ne.s32.totalorder %s2812_s11, %s2808_s10  ;;  %p55_p11 = scmp.eq.s32.totalorder %s2824_s14, 0 }
  0x21   : > { %s3175_s25 = smov (%p40_p9, %s38_s25), 0  ;;  %p2460_p0 = scmp.lt.s32.totalorder %s2824_s14, 3 }
  0x22   : > { %p2930_p12 = por %p55_p11, %p54_p6  ;;  %p2936_p13 = por %p2888_p2, %p54_p6 }
  0x23   : > { %s42_s6 = ssub.s32 %s2820_s13, %s3175_s25  ;;  %s159_s7 = sand.u32 1, %s2812_s11  }
  0x24   : > { %s3165_s5 = scalar_select %p2936_p13, 1, 0 }
  0x25   : > { %p45_p10 = scmp.eq.s32.totalorder %s42_s6, 0  ;;  %s2183_s8 = sshll.u32 %s159_s7, 7 }
  0x26   : > { %s2356_s16 = sshll.u32 %s2820_s13, 11  ;;  %s163_s26 = scalar_lea.vmem [#allocation3], %s2183_s8 }
  0x27   : > { %s2945_s15 = scalar_select %p45_p10, %s2812_s11, %s47_s3  }
  0x28   : > { %s172_s24 = scalar_lea.hbm %s3154_s0, %s2356_s16  ;;  %s173_s27 = sshll.u32 %s163_s26, 4  ;;  %s174_s27 = int_to_ptr.vmem [resolvable:$true] %s173_s27 }
  0x29   : > { %p2953_p2 = pnand %p2460_p0, %p2930_p12  ;;  %s160_s28 = scalar_lea.sflag [#allocation4], %s159_s7 }
  0x2a   : > { %s2725_s29 = scalar_lea.vmem %s174_s27, 2048  ;;  %s2829_s30 = smov [#allocation3]  }
  0x2b   : > { %p2714_p3 = pneg %p2953_p2  ;;  %p2726_p5 = scmp.ne.s32.totalorder %s174_s27, %s2725_s29 }
  0x2c   : > { %s2730_s3 = sshll.u32 %s2829_s30, 4  ;;  %s2731_s3 = int_to_ptr.vmem [resolvable:$false] %s2730_s3 }
  0x2d   : > { %p2728_p7 = pnand %p2726_p5, %p2714_p3  ;;  %s2732_s6 = scalar_lea.vmem %s2731_s3, 4096 }
  0x2e   : > { %p2733_p6 = scmp.lt.s32.totalorder %s174_s27, %s2731_s3  ;;  %p2734_p11 = scmp.lt.s32.totalorder %s2732_s6, %s2725_s29 }
  0x2f   : > { %p2729_p9 = pneg %p2728_p7 }
  0x30   : > { %p2735_p10 = por %p2734_p11, %p2733_p6 }
  0x32   : > { %p2736_p13 = pnand %p2735_p10, %p2729_p9 }
  0x34   : > { %2739 = shalt.err (!%p2736_p13)
}
  0x35   : > { %s2830_s4 = smov 128   ;;  %s2831_s8 = smov 8  }
  0x36   : > { %2454 = dma.hbm_to_vmem [thread:$0]  (!%p2953_p2), %s172_s24, 2048, %s174_s27, %s160_s28, %s2830_s4, %s2830_s4, %s2831_s8  }
  0x37   : > { %185 = sbr.rel (%p2904_p8) target bundleno = 432 (0x1b0), region = 28  ;;  %s2964_s7 = sand.u32 (!%p2904_p8), 1, %s2808_s10  }
  0x38   : > { %s2188_s16 = sshll.u32 (!%p2904_p8), %s2964_s7, 7  ;;  %s188_s22 = scalar_lea.sflag (!%p2904_p8), [#allocation4], %s2964_s7 }
  0x39   : > { %s2968_s23 = scalar_lea.vmem (!%p2904_p8), [#allocation3], %s2188_s16 }
  0x3c   : > { %2791 = dma.done.wait (%p2894_p4), %s188_s22, 2048  }
  0x3d   : > { %2793 = vsyncadd (%p2894_p4), %s188_s22, 4294965248 }
  0x3e   : > { %2795 = dma.done.wait (%p2884_p1), [#allocation7], 12288  }
  0x3f   : > { %2797 = vsyncadd (%p2884_p1), [#allocation7], 4294955008  ;;  %v2518_v0 = vld [vmem:[#allocation6 + $0x154] ss:$24 sps:$4 sm:$0xff]   ;;  %v2522_v2 = vld [vmem:[#allocation6 + $0x150] ss:$24 sps:$4 sm:$0xff]  }
  0x40   : > { %v2520_v1 = vld [vmem:[#allocation6 + $0x15c] ss:$24 sps:$4 sm:$0xff]   ;;  %1090 = vmatprep.subr.bf16.mxu0 %v2518_v0  ;;  %v2523_v3 = vld [vmem:[#allocation6 + $0x158] ss:$24 sps:$4 sm:$0xff]   ;;  %v2526_v5 = vld [vmem:[#allocation6 + $0x12c] ss:$24 sps:$4 sm:$0xff]  }
  0x41   : > { %1203 = vmatprep.subr.bf16.mxu1 %v2520_v1  ;;  %v2524_v4 = vld [vmem:[#allocation6 + $0x124] ss:$24 sps:$4 sm:$0xff]   ;;  %1091 = vmatpush1.bf16.msra.mxu0 %v2522_v2  ;;  %v2528_v6 = vld [vmem:[#allocation6 + $0x120] ss:$24 sps:$4 sm:$0xff]   ;;  %v2530_v8 = vld [vmem:[#allocation6 + $0xf4] ss:$24 sps:$4 sm:$0xff]  }
  0x42   : > { %1204 = vmatpush1.bf16.msra.mxu1 %v2523_v3  ;;  %1092 = vmatprep.subr.bf16.mxu0 %v2524_v4  ;;  %v2529_v7 = vld [vmem:[#allocation6 + $0x128] ss:$24 sps:$4 sm:$0xff]   ;;  %v2532_v9 = vld [vmem:[#allocation6 + $0xfc] ss:$24 sps:$4 sm:$0xff]   ;;  %v2535_v11 = vld [vmem:[#allocation6 + $0xf8] ss:$24 sps:$4 sm:$0xff]  }
  0x43   : > { %1205 = vmatprep.subr.bf16.mxu1 %v2526_v5  ;;  %v2534_v10 = vld [vmem:[#allocation6 + $0xf0] ss:$24 sps:$4 sm:$0xff]   ;;  %v2536_v12 = vld [vmem:[#allocation6 + $0xc4] ss:$24 sps:$4 sm:$0xff]   ;;  %v2540_v14 = vld [vmem:[#allocation6 + $0xc0] ss:$24 sps:$4 sm:$0xff]  }
  0x44   : > { %v2538_v13 = vld [vmem:[#allocation6 + $0xcc] ss:$24 sps:$4 sm:$0xff]   ;;  %v2541_v15 = vld [vmem:[#allocation6 + $0xc8] ss:$24 sps:$4 sm:$0xff]   ;;  %v2544_v17 = vld [vmem:[#allocation6 + $0x9c] ss:$24 sps:$4 sm:$0xff]  }
  0x45   : > { %1093 = vmatpush1.bf16.msra.mxu0 %v2528_v6  ;;  %v2542_v16 = vld [vmem:[#allocation6 + $0x94] ss:$24 sps:$4 sm:$0xff]   ;;  %v2546_v18 = vld [vmem:[#allocation6 + $0x90] ss:$24 sps:$4 sm:$0xff]   ;;  %v2548_v20 = vld [vmem:[#allocation6 + $0x64] ss:$24 sps:$4 sm:$0xff]  }
  0x46   : > { %1206 = vmatpush1.bf16.msra.mxu1 %v2529_v7  ;;  %1094 = vmatprep.subr.bf16.mxu0 %v2530_v8  ;;  %v2547_v19 = vld [vmem:[#allocation6 + $0x98] ss:$24 sps:$4 sm:$0xff]   ;;  %v2550_v21 = vld [vmem:[#allocation6 + $0x6c] ss:$24 sps:$4 sm:$0xff]   ;;  %v2553_v23 = vld [vmem:[#allocation6 + $0x68] ss:$24 sps:$4 sm:$0xff]  }
  0x47   : > { %1207 = vmatprep.subr.bf16.mxu1 %v2532_v9  ;;  %v2552_v22 = vld [vmem:[#allocation6 + $0x60] ss:$24 sps:$4 sm:$0xff]   ;;  %v2554_v24 = vld [vmem:[#allocation6 + $0x34] ss:$24 sps:$4 sm:$0xff]   ;;  %v2558_v26 = vld [vmem:[#allocation6 + $0x30] ss:$24 sps:$4 sm:$0xff]  }
  0x48   : > { %v2556_v25 = vld [vmem:[#allocation6 + $0x3c] ss:$24 sps:$4 sm:$0xff]   ;;  %v2559_v27 = vld [vmem:[#allocation6 + $0x38] ss:$24 sps:$4 sm:$0xff]   ;;  %v2562_v29 = vld [vmem:[#allocation6 + $0xc] ss:$24 sps:$4 sm:$0xff]  }
  0x49   : > { %1095 = vmatpush1.bf16.msra.mxu0 %v2534_v10  ;;  %v2560_v28 = vld [vmem:[#allocation6 + $0x4] ss:$24 sps:$4 sm:$0xff]   ;;  %v2564_v30 = vld [vmem:[#allocation6] ss:$24 sps:$4 sm:$0xff]   ;;  %v2566_v32 = vld [vmem:[#allocation6 + $0x2d4] ss:$24 sps:$4 sm:$0xff]  }
  0x4a   : > { %1208 = vmatpush1.bf16.msra.mxu1 %v2535_v11  ;;  %1096 = vmatprep.subr.bf16.mxu0 %v2536_v12  ;;  %v2565_v31 = vld [vmem:[#allocation6 + $0x8] ss:$24 sps:$4 sm:$0xff]   ;;  %v2568_v33 = vld [vmem:[#allocation6 + $0x2dc] ss:$24 sps:$4 sm:$0xff]   ;;  %v2571_v35 = vld [vmem:[#allocation6 + $0x2d8] ss:$24 sps:$4 sm:$0xff]  }
  0x4b   : > { %1209 = vmatprep.subr.bf16.mxu1 %v2538_v13  ;;  %v2570_v34 = vld [vmem:[#allocation6 + $0x2d0] ss:$24 sps:$4 sm:$0xff]   ;;  %v2572_v36 = vld [vmem:[#allocation6 + $0x2a4] ss:$24 sps:$4 sm:$0xff]   ;;  %v2576_v38 = vld [vmem:[#allocation6 + $0x2a0] ss:$24 sps:$4 sm:$0xff]  }
  0x4c   : > { %v2574_v37 = vld [vmem:[#allocation6 + $0x2ac] ss:$24 sps:$4 sm:$0xff]   ;;  %v2577_v39 = vld [vmem:[#allocation6 + $0x2a8] ss:$24 sps:$4 sm:$0xff]   ;;  %v2580_v41 = vld [vmem:[#allocation6 + $0x27c] ss:$24 sps:$4 sm:$0xff]  }
  0x4d   : > { %1097 = vmatpush1.bf16.msra.mxu0 %v2540_v14  ;;  %v2578_v40 = vld [vmem:[#allocation6 + $0x274] ss:$24 sps:$4 sm:$0xff]   ;;  %v2582_v42 = vld [vmem:[#allocation6 + $0x270] ss:$24 sps:$4 sm:$0xff]   ;;  %v2584_v44 = vld [vmem:[#allocation6 + $0x244] ss:$24 sps:$4 sm:$0xff]  }
  0x4e   : > { %1210 = vmatpush1.bf16.msra.mxu1 %v2541_v15  ;;  %1098 = vmatprep.subr.bf16.mxu0 %v2542_v16  ;;  %v2583_v43 = vld [vmem:[#allocation6 + $0x278] ss:$24 sps:$4 sm:$0xff]   ;;  %v2586_v45 = vld [vmem:[#allocation6 + $0x24c] ss:$24 sps:$4 sm:$0xff]   ;;  %v2589_v47 = vld [vmem:[#allocation6 + $0x248] ss:$24 sps:$4 sm:$0xff]  }
  0x4f   : > { %1211 = vmatprep.subr.bf16.mxu1 %v2544_v17  ;;  %v2588_v46 = vld [vmem:[#allocation6 + $0x240] ss:$24 sps:$4 sm:$0xff]   ;;  %v2979_v48 = vld [vmem:[%s2968_s23 + $0x4] ss:$8 sps:$4 sm:$0xff]   ;;  %v2592_v50 = vld [vmem:[#allocation6 + $0x21c] ss:$24 sps:$4 sm:$0xff]  }
  0x50   : > { %v2590_v49 = vld [vmem:[#allocation6 + $0x214] ss:$24 sps:$4 sm:$0xff]   ;;  %1122 = vmatprep.mubr.bf16.mxu0 %v2979_v48  ;;  %1235 = vmatprep.mubr.bf16.mxu1 %v2979_v48  ;;  %v2594_v51 = vld [vmem:[#allocation6 + $0x210] ss:$24 sps:$4 sm:$0xff]   ;;  %v2596_v53 = vld [vmem:[#allocation6 + $0x1e4] ss:$24 sps:$4 sm:$0xff]  }
  0x51   : > { %1099 = vmatpush1.bf16.msra.mxu0 %v2546_v18  ;;  %v2595_v52 = vld [vmem:[#allocation6 + $0x218] ss:$24 sps:$4 sm:$0xff]   ;;  %v2598_v54 = vld [vmem:[#allocation6 + $0x1ec] ss:$24 sps:$4 sm:$0xff]   ;;  %v2601_v56 = vld [vmem:[#allocation6 + $0x1e8] ss:$24 sps:$4 sm:$0xff]  }
  0x52   : > { %1212 = vmatpush1.bf16.msra.mxu1 %v2547_v19  ;;  %1100 = vmatprep.subr.bf16.mxu0 %v2548_v20  ;;  %v2600_v55 = vld [vmem:[#allocation6 + $0x1e0] ss:$24 sps:$4 sm:$0xff]   ;;  %v2602_v57 = vld [vmem:[#allocation6 + $0x1b4] ss:$24 sps:$4 sm:$0xff]   ;;  %v2606_v59 = vld [vmem:[#allocation6 + $0x1b0] ss:$24 sps:$4 sm:$0xff]  }
  0x53   : > { %1213 = vmatprep.subr.bf16.mxu1 %v2550_v21  ;;  %v2604_v58 = vld [vmem:[#allocation6 + $0x1bc] ss:$24 sps:$4 sm:$0xff]   ;;  %v2607_v60 = vld [vmem:[#allocation6 + $0x1b8] ss:$24 sps:$4 sm:$0xff]   ;;  %v2610_v62 = vld [vmem:[#allocation6 + $0x18c] ss:$24 sps:$4 sm:$0xff]  }
  0x54   : > { %v2608_v61 = vld [vmem:[#allocation6 + $0x184] ss:$24 sps:$4 sm:$0xff]   ;;  %v2612_v63 = vld [vmem:[#allocation6 + $0x180] ss:$24 sps:$4 sm:$0xff]   ;;  %v2622_v4 = vld [vmem:[#allocation6 + $0x134] ss:$24 sps:$4 sm:$0xff]  }
  0x55   : > { %1101 = vmatpush1.bf16.msra.mxu0 %v2552_v22  ;;  %v2613_v0 = vld [vmem:[#allocation6 + $0x188] ss:$24 sps:$4 sm:$0xff]   ;;  %v2619_v1 = vld [vmem:[#allocation6 + $0x164] ss:$24 sps:$4 sm:$0xff]   ;;  %v2994_v8 = vld [vmem:[%s2968_s23 + $0x10] ss:$8 sps:$4 sm:$0xff]  }
  0x56   : > { %1214 = vmatpush1.bf16.msra.mxu1 %v2553_v23  ;;  %1102 = vmatprep.subr.bf16.mxu0 %v2554_v24  ;;  %v2984_v2 = vld [vmem:[%s2968_s23] ss:$8 sps:$4 sm:$0xff]   ;;  %v2987_v5 = vld [vmem:[%s2968_s23 + $0x14] ss:$8 sps:$4 sm:$0xff]   ;;  %v2997_v11 = vld [vmem:[%s2968_s23 + $0x24] ss:$8 sps:$4 sm:$0xff]  }
  0x57   : > { %1215 = vmatprep.subr.bf16.mxu1 %v2556_v25  ;;  %v2617_v3 = vld [vmem:[#allocation6 + $0x160] ss:$24 sps:$4 sm:$0xff]   ;;  %v2620_v6 = vld [vmem:[#allocation6 + $0x130] ss:$24 sps:$4 sm:$0xff]   ;;  %v2628_v7 = vld [vmem:[#allocation6 + $0x104] ss:$24 sps:$4 sm:$0xff]  }
  0x58   : > { %v2626_v9 = vld [vmem:[#allocation6 + $0x100] ss:$24 sps:$4 sm:$0xff]   ;;  %v2631_v10 = vld [vmem:[#allocation6 + $0xd4] ss:$24 sps:$4 sm:$0xff]   ;;  %v2629_v12 = vld [vmem:[#allocation6 + $0xd0] ss:$24 sps:$4 sm:$0xff]  }
  0x59   : > { %1103 = vmatpush1.bf16.msra.mxu0 %v2558_v26  ;;  %v2637_v13 = vld [vmem:[#allocation6 + $0xa4] ss:$24 sps:$4 sm:$0xff]   ;;  %v3004_v14 = vld [vmem:[%s2968_s23 + $0x20] ss:$8 sps:$4 sm:$0xff]   ;;  %v2640_v16 = vld [vmem:[#allocation6 + $0x74] ss:$24 sps:$4 sm:$0xff]  }
  0x5a   : > { %1216 = vmatpush1.bf16.msra.mxu1 %v2559_v27  ;;  %1104 = vmatprep.subr.bf16.mxu0 %v2560_v28  ;;  %v2635_v15 = vld [vmem:[#allocation6 + $0xa0] ss:$24 sps:$4 sm:$0xff]   ;;  %v3007_v17 = vld [vmem:[%s2968_s23 + $0x34] ss:$8 sps:$4 sm:$0xff]   ;;  %v2638_v18 = vld [vmem:[#allocation6 + $0x70] ss:$24 sps:$4 sm:$0xff]  }
  0x5b   : > { %1217 = vmatprep.subr.bf16.mxu1 %v2562_v29  ;;  %v2646_v19 = vld [vmem:[#allocation6 + $0x44] ss:$24 sps:$4 sm:$0xff]   ;;  %v3014_v20 = vld [vmem:[%s2968_s23 + $0x30] ss:$8 sps:$4 sm:$0xff]   ;;  %v2649_v22 = vld [vmem:[#allocation6 + $0x14] ss:$24 sps:$4 sm:$0xff]  }
  0x5c   : > { %v2644_v21 = vld [vmem:[#allocation6 + $0x40] ss:$24 sps:$4 sm:$0xff]   ;;  %v3017_v23 = vld [vmem:[%s2968_s23 + $0x44] ss:$8 sps:$4 sm:$0xff]   ;;  %v2647_v24 = vld [vmem:[#allocation6 + $0x10] ss:$24 sps:$4 sm:$0xff]  }
  0x5d   : > { %1105 = vmatpush1.bf16.msra.mxu0 %v2564_v30  ;;  %v2655_v25 = vld [vmem:[#allocation6 + $0x2e4] ss:$24 sps:$4 sm:$0xff]   ;;  %v3024_v26 = vld [vmem:[%s2968_s23 + $0x40] ss:$8 sps:$4 sm:$0xff]   ;;  %v2658_v28 = vld [vmem:[#allocation6 + $0x2b4] ss:$24 sps:$4 sm:$0xff]  }
  0x5e   : > { %1218 = vmatpush1.bf16.msra.mxu1 %v2565_v31  ;;  %1106 = vmatprep.subr.bf16.mxu0 %v2566_v32  ;;  %v2653_v27 = vld [vmem:[#allocation6 + $0x2e0] ss:$24 sps:$4 sm:$0xff]   ;;  %v3027_v29 = vld [vmem:[%s2968_s23 + $0x54] ss:$8 sps:$4 sm:$0xff]   ;;  %v2656_v30 = vld [vmem:[#allocation6 + $0x2b0] ss:$24 sps:$4 sm:$0xff]  }
  0x5f   : > { %1219 = vmatprep.subr.bf16.mxu1 %v2568_v33  ;;  %v2664_v31 = vld [vmem:[#allocation6 + $0x284] ss:$24 sps:$4 sm:$0xff]   ;;  %v2661_v32 = vld [vmem:[%s2968_s23 + $0x50] ss:$8 sps:$4 sm:$0xff]   ;;  %s2437_s17 = smul.u32 384, %s2964_s7  ;;  %p3167_p4 = scmp.ne.s32.totalorder %s3165_s5, 0 }
  0x60   : > { %v2662_v33 = vld [vmem:[#allocation6 + $0x280] ss:$24 sps:$4 sm:$0xff]   ;;  %s2438_s21 = smul.u32 6144, %s2816_s12  ;;  %s2057_s12 = scalar_lea.sflag [#allocation5], %s2964_s7 }
  0x61   : > { %1107 = vmatpush2.bf16.msra.mxu0 %v2570_v34  ;;  %v2667_v34 = vld [vmem:[#allocation6 + $0x254] ss:$24 sps:$4 sm:$0xff]   ;;  %s3050_s19 = scalar_lea.vmem [#allocation8], %s2437_s17  ;;  %s2832_s29 = smov [#allocation8]  }
  0x62   : > { %1220 = vmatpush2.bf16.msra.mxu1 %v2571_v35  ;;  %1108 = vmatprep.subr.bf16.mxu0 %v2572_v36  ;;  %v2668_v35 = vld [vmem:[%s2968_s23 + $0x64] ss:$8 sps:$4 sm:$0xff]   ;;  %v2665_v36 = vld [vmem:[#allocation6 + $0x250] ss:$24 sps:$4 sm:$0xff]   ;;  %s2073_s24 = sshll.u32 %s3050_s19, 4  ;;  %s3103_s18 = scalar_lea.hbm %s3156_s2, %s2438_s21  ;;  %s3105_s24 = int_to_ptr.vmem [resolvable:$true] %s2073_s24 }
  0x63   : > { %1221 = vmatprep.subr.bf16.mxu1 %v2574_v37  ;;  %v2673_v37 = vld [vmem:[#allocation6 + $0x224] ss:$24 sps:$4 sm:$0xff]   ;;  %s2740_s28 = scalar_lea.vmem %s3105_s24, 6144  ;;  %s2744_s30 = sshll.u32 %s2832_s29, 4  ;;  %s2745_s30 = int_to_ptr.vmem [resolvable:$false] %s2744_s30 }
  0x64   : > { %p2741_p1 = scmp.ne.s32.totalorder %s3105_s24, %s2740_s28  ;;  %s2746_s3 = scalar_lea.vmem %s2745_s30, 12288 }
  0x65   : > { %1109 = vmatpush2.bf16.msra.mxu0 %v2576_v38  ;;  %v2670_v38 = vld [vmem:[%s2968_s23 + $0x60] ss:$8 sps:$4 sm:$0xff]   ;;  %p2747_p13 = scmp.lt.s32.totalorder %s3105_s24, %s2745_s30  ;;  %p2748_p0 = scmp.lt.s32.totalorder %s2746_s3, %s2740_s28 }
  0x66   : > { %1222 = vmatpush2.bf16.msra.mxu1 %v2577_v39  ;;  %1110 = vmatprep.subr.bf16.mxu0 %v2578_v40  ;;  %v2671_v39 = vld [vmem:[#allocation6 + $0x220] ss:$24 sps:$4 sm:$0xff]   ;;  %v2676_v40 = vld [vmem:[#allocation6 + $0x1f4] ss:$24 sps:$4 sm:$0xff]   ;;  %p2742_p8 = pnand %p2741_p1, %p3167_p4 }
  0x67   : > { %1223 = vmatprep.subr.bf16.mxu1 %v2580_v41  ;;  %v2677_v41 = vld [vmem:[%s2968_s23 + $0x74] ss:$8 sps:$4 sm:$0xff]   ;;  %p2749_p2 = por %p2748_p0, %p2747_p13 }
  0x68   : > { %p2743_p12 = pneg %p2742_p8 }
  0x69   : > { %1111 = vmatpush2.bf16.msra.mxu0 %v2582_v42  ;;  %v2674_v42 = vld [vmem:[#allocation6 + $0x1f0] ss:$24 sps:$4 sm:$0xff]  }
  0x6a   : > { %1224 = vmatpush2.bf16.msra.mxu1 %v2583_v43  ;;  %1112 = vmatprep.subr.bf16.mxu0 %v2584_v44  ;;  %v2682_v43 = vld [vmem:[#allocation6 + $0x1c4] ss:$24 sps:$4 sm:$0xff]   ;;  %v2679_v44 = vld [vmem:[%s2968_s23 + $0x70] ss:$8 sps:$4 sm:$0xff]   ;;  %p2750_p3 = pnand %p2749_p2, %p2743_p12 }
  0x6b   : > { %1225 = vmatprep.subr.bf16.mxu1 %v2586_v45  ;;  %v2680_v45 = vld [vmem:[#allocation6 + $0x1c0] ss:$24 sps:$4 sm:$0xff]  }
  0x6d   : > { %1113 = vmatpush2.bf16.msra.mxu0 %v2588_v46  ;;  %v2685_v46 = vld [vmem:[#allocation6 + $0x194] ss:$24 sps:$4 sm:$0xff]  }
  0x6e   : > { %1226 = vmatpush2.bf16.msra.mxu1 %v2589_v47  ;;  %1114 = vmatprep.subr.bf16.mxu0 %v2590_v49  ;;  %v2683_v47 = vld [vmem:[#allocation6 + $0x190] ss:$24 sps:$4 sm:$0xff]  }
  0x6f   : > { %1227 = vmatprep.subr.bf16.mxu1 %v2592_v50 }
  0x71   : > { %1115 = vmatpush2.bf16.msra.mxu0 %v2594_v51 }
  0x72   : > { %1228 = vmatpush2.bf16.msra.mxu1 %v2595_v52  ;;  %1116 = vmatprep.subr.bf16.mxu0 %v2596_v53 }
  0x73   : > { %1229 = vmatprep.subr.bf16.mxu1 %v2598_v54 }
  0x75   : > { %1117 = vmatpush2.bf16.msra.mxu0 %v2600_v55 }
  0x76   : > { %1230 = vmatpush2.bf16.msra.mxu1 %v2601_v56  ;;  %1118 = vmatprep.subr.bf16.mxu0 %v2602_v57 }
  0x77   : > { %1231 = vmatprep.subr.bf16.mxu1 %v2604_v58 }
  0x79   : > { %1119 = vmatpush2.bf16.msra.mxu0 %v2606_v59 }
  0x7a   : > { %1232 = vmatpush2.bf16.msra.mxu1 %v2607_v60  ;;  %1120 = vmatprep.subr.bf16.mxu0 %v2608_v61 }
  0x7b   : > { %1233 = vmatprep.subr.bf16.mxu1 %v2610_v62 }
  0x7d   : > { %1121 = vmatpush2.bf16.msra.mxu0 %v2612_v63 }
  0x7e   : > { %1234 = vmatpush2.bf16.msra.mxu1 %v2613_v0  ;;  %1316 = vmatprep.subr.bf16.mxu0 %v2619_v1 }
  0x7f   : > { %2405 = vmatprep.subr.bf16.mxu1 %v2619_v1 }
  0x80   : > { %1123 = vmatmul.mubr.bf16.vlgmr.msra.gmra.mxu0 %v2984_v2 }
  0x81   : > { %1236 = vmatmul.mubr.bf16.vlgmr.msra.gmra.mxu1 %v2984_v2  ;;  %1317 = vmatpush1.bf16.msra.mxu0 %v2617_v3 }
  0x82   : > { %2421 = vmatpush1.bf16.msra.mxu1 %v2617_v3  ;;  %1318 = vmatprep.subr.bf16.mxu0 %v2622_v4 }
  0x83   : > { %2406 = vmatprep.subr.bf16.mxu1 %v2622_v4  ;;  %1132 = vmatprep.mubr.bf16.mxu0 %v2987_v5 }
  0x84   : > { %1245 = vmatprep.mubr.bf16.mxu1 %v2987_v5 }
  0x85   : > { %1319 = vmatpush1.bf16.msra.mxu0 %v2620_v6 }
  0x86   : > { %2422 = vmatpush1.bf16.msra.mxu1 %v2620_v6  ;;  %1320 = vmatprep.subr.bf16.mxu0 %v2628_v7 }
  0x87   : > { %2407 = vmatprep.subr.bf16.mxu1 %v2628_v7 }
  0x88   : > { %1133 = vmatmul.mubr.bf16.gmra.mxu0 %v2994_v8 }
  0x89   : > { %1246 = vmatmul.mubr.bf16.gmra.mxu1 %v2994_v8  ;;  %1321 = vmatpush1.bf16.msra.mxu0 %v2626_v9 }
  0x8a   : > { %2423 = vmatpush1.bf16.msra.mxu1 %v2626_v9  ;;  %1322 = vmatprep.subr.bf16.mxu0 %v2631_v10 }
  0x8b   : > { %2408 = vmatprep.subr.bf16.mxu1 %v2631_v10  ;;  %1142 = vmatprep.mubr.bf16.mxu0 %v2997_v11 }
  0x8c   : > { %1255 = vmatprep.mubr.bf16.mxu1 %v2997_v11 }
  0x8d   : > { %1323 = vmatpush1.bf16.msra.mxu0 %v2629_v12 }
  0x8e   : > { %2424 = vmatpush1.bf16.msra.mxu1 %v2629_v12  ;;  %1324 = vmatprep.subr.bf16.mxu0 %v2637_v13 }
  0x8f   : > { %2409 = vmatprep.subr.bf16.mxu1 %v2637_v13 }
  0x90   : > { %1143 = vmatmul.mubr.bf16.gmra.mxu0 %v3004_v14 }
  0x91   : > { %1256 = vmatmul.mubr.bf16.gmra.mxu1 %v3004_v14  ;;  %1325 = vmatpush1.bf16.msra.mxu0 %v2635_v15 }
  0x92   : > { %2425 = vmatpush1.bf16.msra.mxu1 %v2635_v15  ;;  %1326 = vmatprep.subr.bf16.mxu0 %v2640_v16 }
  0x93   : > { %2410 = vmatprep.subr.bf16.mxu1 %v2640_v16  ;;  %1152 = vmatprep.mubr.bf16.mxu0 %v3007_v17 }
  0x94   : > { %1265 = vmatprep.mubr.bf16.mxu1 %v3007_v17 }
  0x95   : > { %1327 = vmatpush1.bf16.msra.mxu0 %v2638_v18 }
  0x96   : > { %2426 = vmatpush1.bf16.msra.mxu1 %v2638_v18  ;;  %1328 = vmatprep.subr.bf16.mxu0 %v2646_v19 }
  0x97   : > { %2411 = vmatprep.subr.bf16.mxu1 %v2646_v19 }
  0x98   : > { %1153 = vmatmul.mubr.bf16.gmra.mxu0 %v3014_v20 }
  0x99   : > { %1266 = vmatmul.mubr.bf16.gmra.mxu1 %v3014_v20  ;;  %1329 = vmatpush1.bf16.msra.mxu0 %v2644_v21 }
  0x9a   : > { %2427 = vmatpush1.bf16.msra.mxu1 %v2644_v21  ;;  %1330 = vmatprep.subr.bf16.mxu0 %v2649_v22 }
  0x9b   : > { %2412 = vmatprep.subr.bf16.mxu1 %v2649_v22  ;;  %1162 = vmatprep.mubr.bf16.mxu0 %v3017_v23 }
  0x9c   : > { %1275 = vmatprep.mubr.bf16.mxu1 %v3017_v23 }
  0x9d   : > { %1331 = vmatpush1.bf16.msra.mxu0 %v2647_v24 }
  0x9e   : > { %2428 = vmatpush1.bf16.msra.mxu1 %v2647_v24  ;;  %1332 = vmatprep.subr.bf16.mxu0 %v2655_v25 }
  0x9f   : > { %2413 = vmatprep.subr.bf16.mxu1 %v2655_v25 }
  0xa0   : > { %1163 = vmatmul.mubr.bf16.gmra.mxu0 %v3024_v26 }
  0xa1   : > { %1276 = vmatmul.mubr.bf16.gmra.mxu1 %v3024_v26  ;;  %1333 = vmatpush2.bf16.msra.mxu0 %v2653_v27 }
  0xa2   : > { %2429 = vmatpush2.bf16.msra.mxu1 %v2653_v27  ;;  %1334 = vmatprep.subr.bf16.mxu0 %v2658_v28 }
  0xa3   : > { %2414 = vmatprep.subr.bf16.mxu1 %v2658_v28  ;;  %1172 = vmatprep.mubr.bf16.mxu0 %v3027_v29 }
  0xa4   : > { %1285 = vmatprep.mubr.bf16.mxu1 %v3027_v29 }
  0xa5   : > { %1335 = vmatpush2.bf16.msra.mxu0 %v2656_v30 }
  0xa6   : > { %2430 = vmatpush2.bf16.msra.mxu1 %v2656_v30  ;;  %1336 = vmatprep.subr.bf16.mxu0 %v2664_v31 }
  0xa7   : > { %2415 = vmatprep.subr.bf16.mxu1 %v2664_v31 }
  0xa8   : > { %1173 = vmatmul.mubr.bf16.gmra.mxu0 %v2661_v32 }
  0xa9   : > { %1286 = vmatmul.mubr.bf16.gmra.mxu1 %v2661_v32  ;;  %1337 = vmatpush2.bf16.msra.mxu0 %v2662_v33 }
  0xaa   : > { %2431 = vmatpush2.bf16.msra.mxu1 %v2662_v33  ;;  %1338 = vmatprep.subr.bf16.mxu0 %v2667_v34 }
  0xab   : > { %2416 = vmatprep.subr.bf16.mxu1 %v2667_v34  ;;  %1182 = vmatprep.mubr.bf16.mxu0 %v2668_v35 }
  0xac   : > { %1295 = vmatprep.mubr.bf16.mxu1 %v2668_v35 }
  0xad   : > { %1339 = vmatpush2.bf16.msra.mxu0 %v2665_v36 }
  0xae   : > { %2432 = vmatpush2.bf16.msra.mxu1 %v2665_v36  ;;  %1340 = vmatprep.subr.bf16.mxu0 %v2673_v37 }
  0xaf   : > { %2417 = vmatprep.subr.bf16.mxu1 %v2673_v37 }
  0xb0   : > { %1183 = vmatmul.mubr.bf16.gmra.mxu0 %v2670_v38 }
  0xb1   : > { %1296 = vmatmul.mubr.bf16.gmra.mxu1 %v2670_v38  ;;  %1341 = vmatpush2.bf16.msra.mxu0 %v2671_v39 }
  0xb2   : > { %2433 = vmatpush2.bf16.msra.mxu1 %v2671_v39  ;;  %1342 = vmatprep.subr.bf16.mxu0 %v2676_v40 }
  0xb3   : > { %2418 = vmatprep.subr.bf16.mxu1 %v2676_v40  ;;  %1192 = vmatprep.mubr.bf16.mxu0 %v2677_v41 }
  0xb4   : > { %1305 = vmatprep.mubr.bf16.mxu1 %v2677_v41 }
  0xb5   : > { %1343 = vmatpush2.bf16.msra.mxu0 %v2674_v42 }
  0xb6   : > { %2434 = vmatpush2.bf16.msra.mxu1 %v2674_v42  ;;  %1344 = vmatprep.subr.bf16.mxu0 %v2682_v43 }
  0xb7   : > { %2419 = vmatprep.subr.bf16.mxu1 %v2682_v43 }
  0xb8   : > { %1193 = vmatmul.mubr.bf16.gmra.mxu0 %v2679_v44 }
  0xb9   : > { %1306 = vmatmul.mubr.bf16.gmra.mxu1 %v2679_v44  ;;  %1345 = vmatpush2.bf16.msra.mxu0 %v2680_v45 }
  0xba   : > { %2435 = vmatpush2.bf16.msra.mxu1 %v2680_v45  ;;  %1346 = vmatprep.subr.bf16.mxu0 %v2685_v46 }
  0xbb   : > { %2420 = vmatprep.subr.bf16.mxu1 %v2685_v46  ;;  %1348 = vmatprep.mubr.bf16.mxu0 %v2979_v48 }
  0xbc   : > { %1388 = vmatprep.mubr.bf16.mxu1 %v3017_v23 }
  0xbd   : > { %1347 = vmatpush2.bf16.msra.mxu0 %v2683_v47 }
  0xbe   : > { %2436 = vmatpush2.bf16.msra.mxu1 %v2683_v47 }
  0xc0   : > { %1349 = vmatmul.mubr.bf16.vlgmr.msra.gmra.mxu0 %v2984_v2 }
  0xc1   : > { %1389 = vmatmul.mubr.bf16.vlgmr.msra.gmra.mxu1 %v3024_v26  ;;  %1358 = vmatprep.mubr.bf16.mxu0 %v2987_v5 }
  0xc2   : > { %1398 = vmatprep.mubr.bf16.mxu1 %v3027_v29 }
  0xc8   : > { %1359 = vmatmul.mubr.bf16.gmra.mxu0 %v2994_v8 }
  0xc9   : > { %1399 = vmatmul.mubr.bf16.gmra.mxu1 %v2661_v32  ;;  %1368 = vmatprep.mubr.bf16.mxu0 %v2997_v11 }
  0xca   : > { %1408 = vmatprep.mubr.bf16.mxu1 %v2668_v35 }
  0xd0   : > { %1369 = vmatmul.mubr.bf16.gmra.mxu0 %v3004_v14 }
  0xd1   : > { %1409 = vmatmul.mubr.bf16.gmra.mxu1 %v2670_v38  ;;  %1378 = vmatprep.mubr.bf16.mxu0 %v3007_v17 }
  0xd2   : > { %1418 = vmatprep.mubr.bf16.mxu1 %v2677_v41 }
  0xd8   : > { %1379 = vmatmul.mubr.bf16.gmra.mxu0 %v3014_v20 }
  0xd9   : > { %1419 = vmatmul.mubr.bf16.gmra.mxu1 %v2679_v44 }
 0x140   : > { %v1124_v48 = vpop.f32.mrf.mxu0 }
 0x141   : > { %v1237_v49 = vpop.f32.mrf.mxu1 }
 0x142   : > { %v1126_v50 = vpop.f32.mrf.mxu0 }
 0x143   : > { %v1239_v51 = vpop.f32.mrf.mxu1  ;;  %v2357_v52 = vpack.c.bf16 %v1126_v50, %v1124_v48 }
 0x144   : > { %v2358_v53 = vpack.c.bf16 %v1239_v51, %v1237_v49  ;;  %v1128_v54 = vpop.f32.mrf.mxu0 }
 0x145   : > { %v1241_v55 = vpop.f32.mrf.mxu1  ;;  %2008 = vst [vmem:[%s3050_s19] sm:$0xff] %v2357_v52 }
 0x146   : > { %2009 = vst [vmem:[%s3050_s19 + $0x8] sm:$0xff] %v2358_v53  ;;  %v1130_v56 = vpop.f32.mrf.mxu0 }
 0x147   : > { %v1243_v57 = vpop.f32.mrf.mxu1  ;;  %v2360_v58 = vpack.c.bf16 %v1130_v56, %v1128_v54 }
 0x148   : > { %v2361_v59 = vpack.c.bf16 %v1243_v57, %v1241_v55  ;;  %v1134_v60 = vpop.f32.mrf.mxu0 }
 0x149   : > { %v1247_v61 = vpop.f32.mrf.mxu1  ;;  %2011 = vst [vmem:[%s3050_s19 + $0x18] sm:$0xff] %v2360_v58 }
 0x14a   : > { %2012 = vst [vmem:[%s3050_s19 + $0x20] sm:$0xff] %v2361_v59  ;;  %v1136_v62 = vpop.f32.mrf.mxu0 }
 0x14b   : > { %v1249_v63 = vpop.f32.mrf.mxu1  ;;  %v2363_v0 = vpack.c.bf16 %v1136_v62, %v1134_v60 }
 0x14c   : > { %v2364_v1 = vpack.c.bf16 %v1249_v63, %v1247_v61  ;;  %v1138_v2 = vpop.f32.mrf.mxu0 }
 0x14d   : > { %v1251_v3 = vpop.f32.mrf.mxu1  ;;  %2014 = vst [vmem:[%s3050_s19 + $0x30] sm:$0xff] %v2363_v0 }
 0x14e   : > { %2015 = vst [vmem:[%s3050_s19 + $0x38] sm:$0xff] %v2364_v1  ;;  %v1140_v4 = vpop.f32.mrf.mxu0 }
 0x14f   : > { %v1253_v5 = vpop.f32.mrf.mxu1  ;;  %v2366_v6 = vpack.c.bf16 %v1140_v4, %v1138_v2 }
 0x150   : > { %v2367_v7 = vpack.c.bf16 %v1253_v5, %v1251_v3  ;;  %v1144_v8 = vpop.f32.mrf.mxu0 }
 0x151   : > { %v1257_v9 = vpop.f32.mrf.mxu1  ;;  %2017 = vst [vmem:[%s3050_s19 + $0x48] sm:$0xff] %v2366_v6 }
 0x152   : > { %2018 = vst [vmem:[%s3050_s19 + $0x50] sm:$0xff] %v2367_v7  ;;  %v1146_v10 = vpop.f32.mrf.mxu0 }
 0x153   : > { %v1259_v11 = vpop.f32.mrf.mxu1  ;;  %v2369_v12 = vpack.c.bf16 %v1146_v10, %v1144_v8 }
 0x154   : > { %v2370_v13 = vpack.c.bf16 %v1259_v11, %v1257_v9  ;;  %v1148_v14 = vpop.f32.mrf.mxu0 }
 0x155   : > { %v1261_v15 = vpop.f32.mrf.mxu1  ;;  %2020 = vst [vmem:[%s3050_s19 + $0x60] sm:$0xff] %v2369_v12 }
 0x156   : > { %2021 = vst [vmem:[%s3050_s19 + $0x68] sm:$0xff] %v2370_v13  ;;  %v1150_v16 = vpop.f32.mrf.mxu0 }
 0x157   : > { %v1263_v17 = vpop.f32.mrf.mxu1  ;;  %v2372_v18 = vpack.c.bf16 %v1150_v16, %v1148_v14 }
 0x158   : > { %v2373_v19 = vpack.c.bf16 %v1263_v17, %v1261_v15  ;;  %v1154_v20 = vpop.f32.mrf.mxu0 }
 0x159   : > { %v1267_v21 = vpop.f32.mrf.mxu1  ;;  %2023 = vst [vmem:[%s3050_s19 + $0x78] sm:$0xff] %v2372_v18 }
 0x15a   : > { %2024 = vst [vmem:[%s3050_s19 + $0x80] sm:$0xff] %v2373_v19  ;;  %v1156_v22 = vpop.f32.mrf.mxu0 }
 0x15b   : > { %v1269_v23 = vpop.f32.mrf.mxu1  ;;  %v2375_v24 = vpack.c.bf16 %v1156_v22, %v1154_v20 }
 0x15c   : > { %v2376_v25 = vpack.c.bf16 %v1269_v23, %v1267_v21  ;;  %v1158_v26 = vpop.f32.mrf.mxu0 }
 0x15d   : > { %v1271_v27 = vpop.f32.mrf.mxu1  ;;  %2026 = vst [vmem:[%s3050_s19 + $0x90] sm:$0xff] %v2375_v24 }
 0x15e   : > { %2027 = vst [vmem:[%s3050_s19 + $0x98] sm:$0xff] %v2376_v25  ;;  %v1160_v28 = vpop.f32.mrf.mxu0 }
 0x15f   : > { %v1273_v29 = vpop.f32.mrf.mxu1  ;;  %v2378_v30 = vpack.c.bf16 %v1160_v28, %v1158_v26 }
 0x160   : > { %v2379_v31 = vpack.c.bf16 %v1273_v29, %v1271_v27  ;;  %v1164_v32 = vpop.f32.mrf.mxu0 }
 0x161   : > { %v1277_v33 = vpop.f32.mrf.mxu1  ;;  %2029 = vst [vmem:[%s3050_s19 + $0xa8] sm:$0xff] %v2378_v30 }
 0x162   : > { %2030 = vst [vmem:[%s3050_s19 + $0xb0] sm:$0xff] %v2379_v31  ;;  %v1166_v34 = vpop.f32.mrf.mxu0 }
 0x163   : > { %v1279_v35 = vpop.f32.mrf.mxu1  ;;  %v2381_v36 = vpack.c.bf16 %v1166_v34, %v1164_v32 }
 0x164   : > { %v2382_v37 = vpack.c.bf16 %v1279_v35, %v1277_v33  ;;  %v1168_v38 = vpop.f32.mrf.mxu0 }
 0x165   : > { %v1281_v39 = vpop.f32.mrf.mxu1  ;;  %2032 = vst [vmem:[%s3050_s19 + $0xc0] sm:$0xff] %v2381_v36 }
 0x166   : > { %2033 = vst [vmem:[%s3050_s19 + $0xc8] sm:$0xff] %v2382_v37  ;;  %v1170_v40 = vpop.f32.mrf.mxu0 }
 0x167   : > { %v1283_v41 = vpop.f32.mrf.mxu1  ;;  %v2384_v42 = vpack.c.bf16 %v1170_v40, %v1168_v38 }
 0x168   : > { %v2385_v43 = vpack.c.bf16 %v1283_v41, %v1281_v39  ;;  %v1174_v44 = vpop.f32.mrf.mxu0 }
 0x169   : > { %v1287_v45 = vpop.f32.mrf.mxu1  ;;  %2035 = vst [vmem:[%s3050_s19 + $0xd8] sm:$0xff] %v2384_v42 }
 0x16a   : > { %2036 = vst [vmem:[%s3050_s19 + $0xe0] sm:$0xff] %v2385_v43  ;;  %v1176_v46 = vpop.f32.mrf.mxu0 }
 0x16b   : > { %v1289_v47 = vpop.f32.mrf.mxu1  ;;  %v2387_v48 = vpack.c.bf16 %v1176_v46, %v1174_v44 }
 0x16c   : > { %v2388_v49 = vpack.c.bf16 %v1289_v47, %v1287_v45  ;;  %v1178_v50 = vpop.f32.mrf.mxu0 }
 0x16d   : > { %v1291_v51 = vpop.f32.mrf.mxu1  ;;  %2038 = vst [vmem:[%s3050_s19 + $0xf0] sm:$0xff] %v2387_v48 }
 0x16e   : > { %2039 = vst [vmem:[%s3050_s19 + $0xf8] sm:$0xff] %v2388_v49  ;;  %v1180_v52 = vpop.f32.mrf.mxu0 }
 0x16f   : > { %v1293_v53 = vpop.f32.mrf.mxu1  ;;  %v2390_v54 = vpack.c.bf16 %v1180_v52, %v1178_v50 }
 0x170   : > { %v2391_v55 = vpack.c.bf16 %v1293_v53, %v1291_v51  ;;  %v1184_v56 = vpop.f32.mrf.mxu0 }
 0x171   : > { %v1297_v57 = vpop.f32.mrf.mxu1  ;;  %2041 = vst [vmem:[%s3050_s19 + $0x108] sm:$0xff] %v2390_v54 }
 0x172   : > { %2042 = vst [vmem:[%s3050_s19 + $0x110] sm:$0xff] %v2391_v55  ;;  %v1186_v58 = vpop.f32.mrf.mxu0 }
 0x173   : > { %v1299_v59 = vpop.f32.mrf.mxu1  ;;  %v2393_v60 = vpack.c.bf16 %v1186_v58, %v1184_v56 }
 0x174   : > { %v2394_v61 = vpack.c.bf16 %v1299_v59, %v1297_v57  ;;  %v1188_v62 = vpop.f32.mrf.mxu0 }
 0x175   : > { %v1301_v63 = vpop.f32.mrf.mxu1  ;;  %2044 = vst [vmem:[%s3050_s19 + $0x120] sm:$0xff] %v2393_v60 }
 0x176   : > { %2045 = vst [vmem:[%s3050_s19 + $0x128] sm:$0xff] %v2394_v61  ;;  %v1190_v0 = vpop.f32.mrf.mxu0 }
 0x177   : > { %v1303_v1 = vpop.f32.mrf.mxu1  ;;  %v2396_v2 = vpack.c.bf16 %v1190_v0, %v1188_v62 }
 0x178   : > { %v2397_v3 = vpack.c.bf16 %v1303_v1, %v1301_v63  ;;  %v1194_v4 = vpop.f32.mrf.mxu0 }
 0x179   : > { %v1307_v5 = vpop.f32.mrf.mxu1  ;;  %2047 = vst [vmem:[%s3050_s19 + $0x138] sm:$0xff] %v2396_v2 }
 0x17a   : > { %2048 = vst [vmem:[%s3050_s19 + $0x140] sm:$0xff] %v2397_v3  ;;  %v1196_v6 = vpop.f32.mrf.mxu0 }
 0x17b   : > { %v1309_v7 = vpop.f32.mrf.mxu1  ;;  %v2399_v8 = vpack.c.bf16 %v1196_v6, %v1194_v4 }
 0x17c   : > { %v2400_v9 = vpack.c.bf16 %v1309_v7, %v1307_v5  ;;  %v1198_v10 = vpop.f32.mrf.mxu0 }
 0x17d   : > { %v1311_v11 = vpop.f32.mrf.mxu1  ;;  %2050 = vst [vmem:[%s3050_s19 + $0x150] sm:$0xff] %v2399_v8 }
 0x17e   : > { %2051 = vst [vmem:[%s3050_s19 + $0x158] sm:$0xff] %v2400_v9  ;;  %v1200_v12 = vpop.f32.mrf.mxu0 }
 0x17f   : > { %v1313_v13 = vpop.f32.mrf.mxu1  ;;  %v2402_v14 = vpack.c.bf16 %v1200_v12, %v1198_v10 }
 0x180   : > { %v2403_v15 = vpack.c.bf16 %v1313_v13, %v1311_v11  ;;  %v1350_v16 = vpop.f32.mrf.mxu0 }
 0x181   : > { %v1390_v17 = vpop.f32.mrf.mxu1  ;;  %2053 = vst [vmem:[%s3050_s19 + $0x168] sm:$0xff] %v2402_v14 }
 0x182   : > { %2054 = vst [vmem:[%s3050_s19 + $0x170] sm:$0xff] %v2403_v15  ;;  %v1352_v18 = vpop.f32.mrf.mxu0 }
 0x183   : > { %v1392_v19 = vpop.f32.mrf.mxu1  ;;  %v2359_v20 = vpack.c.bf16 %v1352_v18, %v1350_v16 }
 0x184   : > { %v2383_v21 = vpack.c.bf16 %v1392_v19, %v1390_v17  ;;  %v1354_v22 = vpop.f32.mrf.mxu0 }
 0x185   : > { %v1394_v23 = vpop.f32.mrf.mxu1  ;;  %2010 = vst [vmem:[%s3050_s19 + $0x10] sm:$0xff] %v2359_v20 }
 0x186   : > { %2034 = vst [vmem:[%s3050_s19 + $0xd0] sm:$0xff] %v2383_v21  ;;  %v1356_v24 = vpop.f32.mrf.mxu0 }
 0x187   : > { %v1396_v25 = vpop.f32.mrf.mxu1  ;;  %v2362_v26 = vpack.c.bf16 %v1356_v24, %v1354_v22 }
 0x188   : > { %v2386_v27 = vpack.c.bf16 %v1396_v25, %v1394_v23  ;;  %v1360_v28 = vpop.f32.mrf.mxu0 }
 0x189   : > { %v1400_v29 = vpop.f32.mrf.mxu1  ;;  %2013 = vst [vmem:[%s3050_s19 + $0x28] sm:$0xff] %v2362_v26 }
 0x18a   : > { %2037 = vst [vmem:[%s3050_s19 + $0xe8] sm:$0xff] %v2386_v27  ;;  %v1362_v30 = vpop.f32.mrf.mxu0 }
 0x18b   : > { %v1402_v31 = vpop.f32.mrf.mxu1  ;;  %v2365_v32 = vpack.c.bf16 %v1362_v30, %v1360_v28 }
 0x18c   : > { %v2389_v33 = vpack.c.bf16 %v1402_v31, %v1400_v29  ;;  %v1364_v34 = vpop.f32.mrf.mxu0 }
 0x18d   : > { %v1404_v35 = vpop.f32.mrf.mxu1  ;;  %2016 = vst [vmem:[%s3050_s19 + $0x40] sm:$0xff] %v2365_v32 }
 0x18e   : > { %2040 = vst [vmem:[%s3050_s19 + $0x100] sm:$0xff] %v2389_v33  ;;  %v1366_v36 = vpop.f32.mrf.mxu0 }
 0x18f   : > { %v1406_v37 = vpop.f32.mrf.mxu1  ;;  %v2368_v38 = vpack.c.bf16 %v1366_v36, %v1364_v34 }
 0x190   : > { %v2392_v39 = vpack.c.bf16 %v1406_v37, %v1404_v35  ;;  %v1370_v40 = vpop.f32.mrf.mxu0 }
 0x191   : > { %v1410_v41 = vpop.f32.mrf.mxu1  ;;  %2019 = vst [vmem:[%s3050_s19 + $0x58] sm:$0xff] %v2368_v38 }
 0x192   : > { %2043 = vst [vmem:[%s3050_s19 + $0x118] sm:$0xff] %v2392_v39  ;;  %v1372_v42 = vpop.f32.mrf.mxu0 }
 0x193   : > { %v1412_v43 = vpop.f32.mrf.mxu1  ;;  %v2371_v44 = vpack.c.bf16 %v1372_v42, %v1370_v40 }
 0x194   : > { %v2395_v45 = vpack.c.bf16 %v1412_v43, %v1410_v41  ;;  %v1374_v46 = vpop.f32.mrf.mxu0 }
 0x195   : > { %v1414_v47 = vpop.f32.mrf.mxu1  ;;  %2022 = vst [vmem:[%s3050_s19 + $0x70] sm:$0xff] %v2371_v44 }
 0x196   : > { %2046 = vst [vmem:[%s3050_s19 + $0x130] sm:$0xff] %v2395_v45  ;;  %v1376_v48 = vpop.f32.mrf.mxu0 }
 0x197   : > { %v1416_v49 = vpop.f32.mrf.mxu1  ;;  %v2374_v50 = vpack.c.bf16 %v1376_v48, %v1374_v46 }
 0x198   : > { %v2398_v51 = vpack.c.bf16 %v1416_v49, %v1414_v47  ;;  %v1380_v52 = vpop.f32.mrf.mxu0 }
 0x199   : > { %v1420_v53 = vpop.f32.mrf.mxu1  ;;  %2025 = vst [vmem:[%s3050_s19 + $0x88] sm:$0xff] %v2374_v50 }
 0x19a   : > { %2049 = vst [vmem:[%s3050_s19 + $0x148] sm:$0xff] %v2398_v51  ;;  %v1382_v54 = vpop.f32.mrf.mxu0 }
 0x19b   : > { %v1422_v55 = vpop.f32.mrf.mxu1  ;;  %v2377_v56 = vpack.c.bf16 %v1382_v54, %v1380_v52 }
 0x19c   : > { %v2401_v57 = vpack.c.bf16 %v1422_v55, %v1420_v53  ;;  %v1384_v58 = vpop.f32.mrf.mxu0 }
 0x19d   : > { %v1424_v59 = vpop.f32.mrf.mxu1  ;;  %2028 = vst [vmem:[%s3050_s19 + $0xa0] sm:$0xff] %v2377_v56 }
 0x19e   : > { %2052 = vst [vmem:[%s3050_s19 + $0x160] sm:$0xff] %v2401_v57  ;;  %v1386_v60 = vpop.f32.mrf.mxu0 }
 0x19f   : > { %v1426_v61 = vpop.f32.mrf.mxu1  ;;  %v2380_v62 = vpack.c.bf16 %v1386_v60, %v1384_v58 }
 0x1a0   : > { %v2404_v63 = vpack.c.bf16 %v1426_v61, %v1424_v59 }
 0x1a1   : > { %2031 = vst [vmem:[%s3050_s19 + $0xb8] sm:$0xff] %v2380_v62 }
 0x1a2   : > { %2055 = vst [vmem:[%s3050_s19 + $0x178] sm:$0xff] %v2404_v63 }
 0x1a3   : > { %2753 = shalt.err (!%p2750_p3)
}
 0x1a4   : > { %s2754_s6 = scalar_lea.hbm %s3103_s18, 6144  ;;  %s2758_s16 = scalar_lea.hbm %s3156_s2, 18432 }
 0x1a5   : > { %p2755_p5 = scmp.ne.s32.totalorder %s3103_s18, %s2754_s6  ;;  %p2759_p6 = scmp.lt.s32.totalorder %s3103_s18, %s3156_s2 }
 0x1a6   : > { %p2760_p11 = scmp.lt.s32.totalorder %s2758_s16, %s2754_s6 }
 0x1a7   : > { %p2756_p7 = pnand %p2755_p5, %p3167_p4 }
 0x1a8   : > { %p2761_p10 = por %p2760_p11, %p2759_p6 }
 0x1a9   : > { %p2757_p9 = pneg %p2756_p7 }
 0x1ab   : > { %p2762_p1 = pnand %p2761_p10, %p2757_p9 }
 0x1ad   : > { %2765 = shalt.err (!%p2762_p1)
}
 0x1ae   : > { %s2833_s17 = smov 384   ;;  %s2834_s19 = smov 24  }
 0x1af   : > { %2445 = dma.vmem_to_hbm [thread:$0]  (%p3167_p4), %s3105_s24, 6144, %s3103_s18, %s2057_s12, %s2833_s17, %s2833_s17, %s2834_s19  }
 0x1b0 PF: > { %p2462_p8 = scmp.ge.s32.totalorder %s2824_s14, 2  ;;  %s2088_s21 = sand.u32 1, %s2804_s9  }
 0x1b1   : > { %p3168_p12 = scmp.ne.s32.totalorder %s3161_s20, 0  ;;  %s2089_s26 = scalar_lea.sflag [#allocation5], %s2088_s21 }
 0x1b3   : > { %p2456_p13 = pnand %p2462_p8, %p3168_p12 }
 0x1b5   : > { %p2457_p0 = pneg %p2456_p13 }
 0x1b7   : > { %2799 = dma.done.wait (%p2457_p0), %s2089_s26, 6144  }
 0x1b8   : > { %2801 = vsyncadd (%p2457_p0), %s2089_s26, 4294961152  ;;  %s19_s14 = sadd.s32 1, %s2824_s14   ;;  %s3169_s9 = smov %s2808_s10 }
 0x1b9   : > { %p16_p2 = scmp.ge.s32.totalorder %s19_s14, 5   ;;  %s3170_s10 = smov %s2812_s11 }
 0x1ba   : > { %s3171_s11 = smov %s2945_s15  ;;  %s3172_s12 = smov %s2820_s13 }
 0x1bb   : > { %s3173_s13 = smov %s3175_s25  ;;  %18 = sbr.rel (!%p16_p2) target bundleno = 7 (0x7), region = 86 }
 0x1c0   :  { %2094 = vsyncpa [#allocation4], 1 }
 0x1c1   :  { %2096 = vsyncpa [#allocation4 + $0x1], 1 }
 0x1c2   :  { %2097 = vsyncpa [#allocation7], 1 }
 0x1c3   :  { %2098 = vsyncpa [#allocation5], 1 }
 0x1c4   :  { %2100 = vsyncpa [#allocation5 + $0x1], 1 }

</bundles_post_ra>
